<compile_context>
chip_gen: v7x
topology: tpu7x:2x2x1
jax: 0.10.0
libtpu: 0.0.40
codegen_flags: <defaults>
</compile_context>

<pallas_src>
import jax
import jax.numpy as jnp
from jax.experimental import pallas as pl
from jax.experimental.pallas import tpu as pltpu

NEGATIVE_SLOPE = 0.1
BN_EPS = 1e-5
NEG_BIG = -1e30          # finite "-inf" for padded vocab columns / running-max init


def _logits_kernel(x_ref, w1_ref, gamma_ref, beta_ref, w2_ref, b2_ref,
                   logits_ref, m_ref, l_ref,
                   h_act, m_run, l_run):
    j = pl.program_id(0)

    # ---- first Linear + BatchNorm1d + LeakyReLU: computed once, kept in VMEM.
    @pl.when(j == 0)
    def _():
        h = jnp.dot(x_ref[...], w1_ref[...],
                    preferred_element_type=jnp.float32)           # (B, E)  MXU
        mean = jnp.mean(h, axis=0, keepdims=True)                 # (1, E)
        var = jnp.mean((h - mean) * (h - mean), axis=0, keepdims=True)
        scale = gamma_ref[...] * jax.lax.rsqrt(var + BN_EPS)      # folded BN
        shift = beta_ref[...] - mean * scale
        h_bn = h * scale + shift
        h_act[...] = jnp.maximum(h_bn, NEGATIVE_SLOPE * h_bn)     # LeakyReLU(0.1)
        m_run[...] = jnp.full_like(m_run, NEG_BIG)
        l_run[...] = jnp.zeros_like(l_run)

    # ---- second Linear on this vocab tile (w2 may be streamed as bf16) --- MXU
    w2 = w2_ref[...]
    if w2.dtype != jnp.float32:
        w2 = w2.astype(jnp.float32)
    logits = jnp.dot(h_act[...], w2, preferred_element_type=jnp.float32)
    logits = logits + b2_ref[...]                                 # (B, TILE_V)
    logits_ref[...] = logits                                      # lane-dense store

    # ---- streaming (online) softmax statistics across vocab tiles ----------
    m_prev = m_run[...]
    m_new = jnp.maximum(m_prev, jnp.max(logits, axis=1, keepdims=True))
    l_run[...] = (l_run[...] * jnp.exp(m_prev - m_new)
                  + jnp.sum(jnp.exp(logits - m_new), axis=1, keepdims=True))
    m_run[...] = m_new

    @pl.when(j == pl.num_programs(0) - 1)
    def _():
        m_ref[...] = m_run[...]
        l_ref[...] = l_run[...]


def _softmax_finalize_kernel(logits_ref, m_ref, l_ref, out_ref):
    inv_l = pl.reciprocal(l_ref[...], approx=False)               # (B, 1)
    out_ref[...] = jnp.exp(logits_ref[...] - m_ref[...]) * inv_l


def generator_forward(x, w1, gamma, beta, w2, b2, *, tile_v=2048, weight_dtype=None):
    """x: (B, topic_num) f32; w1: (T, E); gamma/beta: (E,); w2: (E, V); b2: (V,).

    Linear weights are stored pre-transposed (in_features, out_features).
    Returns (B, V) f32 word distribution (rows sum to 1).
    """
    B, T = x.shape
    E = w1.shape[1]
    V = w2.shape[1]

    # Vocab tile: multiple of 128 lanes, capped at the 128-padded vocab size.
    v_pad128 = max(128, ((V + 127) // 128) * 128)
    tile_v = max(128, (min(tile_v, v_pad128) // 128) * 128)
    n_v = pl.cdiv(V, tile_v)
    v_pad = n_v * tile_v

    gamma2 = gamma.reshape(1, E).astype(jnp.float32)
    beta2 = beta.reshape(1, E).astype(jnp.float32)
    b2p = b2.reshape(1, V).astype(jnp.float32)
    w2p = w2.astype(jnp.float32)
    if v_pad != V:
        w2p = jnp.pad(w2p, ((0, 0), (0, v_pad - V)))
        # Padded columns get a hugely negative bias so softmax assigns them 0.
        b2p = jnp.pad(b2p, ((0, 0), (0, v_pad - V)), constant_values=NEG_BIG)
    if weight_dtype is not None:
        w2p = w2p.astype(weight_dtype)   # e.g. bf16: halves dominant HBM traffic

    w2_bytes = int(E) * int(v_pad) * int(jnp.dtype(w2p.dtype).itemsize)
    cost = pl.CostEstimate(
        flops=2 * B * T * E + 2 * B * E * v_pad + 8 * B * v_pad,
        transcendentals=B * v_pad,
        bytes_accessed=w2_bytes + 4 * (B * T + T * E + 2 * E + v_pad
                                       + B * v_pad + 2 * B),
    )

    # ---- pass 1: logits per vocab tile + streaming softmax stats ------------
    logits, m_fin, l_fin = pl.pallas_call(
        _logits_kernel,
        grid=(n_v,),
        in_specs=[
            pl.BlockSpec((B, T), lambda j: (0, 0)),        # x      (VMEM-resident)
            pl.BlockSpec((T, E), lambda j: (0, 0)),        # w1     (VMEM-resident)
            pl.BlockSpec((1, E), lambda j: (0, 0)),        # gamma
            pl.BlockSpec((1, E), lambda j: (0, 0)),        # beta
            pl.BlockSpec((E, tile_v), lambda j: (0, j)),   # w2 tile (streamed)
            pl.BlockSpec((1, tile_v), lambda j: (0, j)),   # b2 tile
        ],
        out_specs=[
            pl.BlockSpec((B, tile_v), lambda j: (0, j)),   # logits tile
            pl.BlockSpec((B, 1), lambda j: (0, 0)),        # final row max
            pl.BlockSpec((B, 1), lambda j: (0, 0)),        # final denom
        ],
        out_shape=[
            jax.ShapeDtypeStruct((B, v_pad), jnp.float32),
            jax.ShapeDtypeStruct((B, 1), jnp.float32),
            jax.ShapeDtypeStruct((B, 1), jnp.float32),
        ],
        scratch_shapes=[
            pltpu.VMEM((B, E), jnp.float32),   # h_act (first-layer activations)
            pltpu.VMEM((B, 1), jnp.float32),   # running max
            pltpu.VMEM((B, 1), jnp.float32),   # running denom
        ],
        compiler_params=pltpu.CompilerParams(
            dimension_semantics=("arbitrary",),            # scratch carries state
            vmem_limit_bytes=32 * 1024 * 1024,
        ),
        cost_estimate=cost,
    )(x, w1, gamma2, beta2, w2p, b2p)

    # ---- pass 2: normalize each tile: exp(z - m) / l -------------------------
    out_padded = pl.pallas_call(
        _softmax_finalize_kernel,
        grid=(n_v,),
        in_specs=[
            pl.BlockSpec((B, tile_v), lambda j: (0, j)),
            pl.BlockSpec((B, 1), lambda j: (0, 0)),
            pl.BlockSpec((B, 1), lambda j: (0, 0)),
        ],
        out_specs=pl.BlockSpec((B, tile_v), lambda j: (0, j)),
        out_shape=jax.ShapeDtypeStruct((B, v_pad), jnp.float32),
        compiler_params=pltpu.CompilerParams(
            dimension_semantics=("parallel",),
        ),
    )(logits, m_fin, l_fin)

    return out_padded[:, :V]


def reference_forward(x, w1, gamma, beta, w2, b2):
    hp = jax.lax.Precision.HIGHEST
    h = jnp.dot(x, w1, precision=hp)
    mean = jnp.mean(h, axis=0, keepdims=True)
    var = jnp.mean((h - mean) ** 2, axis=0, keepdims=True)
    h = (h - mean) / jnp.sqrt(var + BN_EPS)
    h = h * gamma[None, :] + beta[None, :]
    h = jnp.where(h >= 0, h, NEGATIVE_SLOPE * h)
    logits = jnp.dot(h, w2, precision=hp) + b2[None, :]
    return jax.nn.softmax(logits, axis=1)


if __name__ == "__main__":
    batch = 8
    topic_num = 16
    embedding_dim = 128          # multiple of 128 lanes (MXU/vreg friendly)
    vocab_size = 1100            # deliberately NOT a multiple of the vocab tile

    key = jax.random.PRNGKey(0)
    kx, kw1, kw2, kb2 = jax.random.split(key, 4)

    # sampled_x: topic proportions (batch, topic_num)
    x = jax.nn.softmax(jax.random.normal(kx, (batch, topic_num), jnp.float32), axis=1)

    # PyTorch Linear stores weight as (out, in); kernel expects pre-transposed (in, out).
    w1 = (jax.random.uniform(kw1, (topic_num, embedding_dim), jnp.float32,
                             minval=-1.0, maxval=1.0) / jnp.sqrt(topic_num))
    gamma = jnp.ones((embedding_dim,), jnp.float32)   # BatchNorm1d weight init
    beta = jnp.zeros((embedding_dim,), jnp.float32)   # BatchNorm1d bias init
    w2 = (jax.random.uniform(kw2, (embedding_dim, vocab_size), jnp.float32,
                             minval=-1.0, maxval=1.0) / jnp.sqrt(embedding_dim))
    b2 = (jax.random.uniform(kb2, (vocab_size,), jnp.float32,
                             minval=-1.0, maxval=1.0) / jnp.sqrt(embedding_dim))

    # f32 path: exercises vocab tiling (3 tiles of 512) + padding + streaming softmax.
    out = jax.block_until_ready(
        generator_forward(x, w1, gamma, beta, w2, b2, tile_v=512))
    ref = reference_forward(x, w1, gamma, beta, w2, b2)

    assert out.shape == (batch, vocab_size)
    assert bool(jnp.all(jnp.isfinite(out)))
    assert jnp.allclose(jnp.sum(out, axis=1), 1.0, atol=1e-4)
    assert jnp.allclose(out, ref, atol=1e-6, rtol=2e-2)

    # bf16-streamed w2 path (halves the dominant HBM weight traffic).
    out_bf16 = jax.block_until_ready(
        generator_forward(x, w1, gamma, beta, w2, b2, tile_v=512,
                          weight_dtype=jnp.bfloat16))
    assert out_bf16.shape == (batch, vocab_size)
    assert jnp.allclose(jnp.sum(out_bf16, axis=1), 1.0, atol=1e-4)
    assert jnp.allclose(out_bf16, out, atol=2e-3, rtol=5e-2)

    print("KERNEL_OK")
</pallas_src>

<mosaic_0001>
module attributes {stable_mosaic.version = 11 : i64} {
  func.func @_logits_kernel(%arg0: i32, %arg1: memref<8x16xf32, #tpu.memory_space<vmem>>, %arg2: memref<16x128xf32, #tpu.memory_space<vmem>>, %arg3: memref<1x128xf32, #tpu.memory_space<vmem>>, %arg4: memref<1x128xf32, #tpu.memory_space<vmem>>, %arg5: memref<128x512xf32, #tpu.memory_space<vmem>>, %arg6: memref<1x512xf32, #tpu.memory_space<vmem>>, %arg7: memref<8x512xf32, #tpu.memory_space<vmem>>, %arg8: memref<8x1xf32, #tpu.memory_space<vmem>>, %arg9: memref<8x1xf32, #tpu.memory_space<vmem>>, %arg10: memref<8x128xf32, #tpu.memory_space<vmem>>, %arg11: memref<8x1xf32, #tpu.memory_space<vmem>>, %arg12: memref<8x1xf32, #tpu.memory_space<vmem>>) attributes {dimension_semantics = [#tpu.dimension_semantics<arbitrary>], iteration_bounds = array<i64: 3>, scalar_prefetch = 0 : i64, scratch_operands = 3 : i64, tpu.core_type = #tpu.core_type<tc>, window_params = [{pipeline_mode = #tpu.pipeline_mode<synchronous>, transform_indices = @transform_0, window_bounds = array<i64: 8, 16>}, {pipeline_mode = #tpu.pipeline_mode<synchronous>, transform_indices = @transform_1, window_bounds = array<i64: 16, 128>}, {pipeline_mode = #tpu.pipeline_mode<synchronous>, transform_indices = @transform_2, window_bounds = array<i64: 1, 128>}, {pipeline_mode = #tpu.pipeline_mode<synchronous>, transform_indices = @transform_3, window_bounds = array<i64: 1, 128>}, {transform_indices = @transform_4, window_bounds = array<i64: 128, 512>}, {transform_indices = @transform_5, window_bounds = array<i64: 1, 512>}, {transform_indices = @transform_6, window_bounds = array<i64: 8, 512>}, {pipeline_mode = #tpu.pipeline_mode<synchronous>, transform_indices = @transform_7, window_bounds = array<i64: 8, 1>}, {pipeline_mode = #tpu.pipeline_mode<synchronous>, transform_indices = @transform_8, window_bounds = array<i64: 8, 1>}]} {
    %c0_i32 = arith.constant 0 : i32
    %0 = arith.cmpi eq, %arg0, %c0_i32 : i32
    %1 = arith.extui %0 : i1 to i32
    %c0_i32_0 = arith.constant 0 : i32
    %2 = arith.cmpi ne, %1, %c0_i32_0 : i32
    scf.if %2 {
      %c0_19 = arith.constant 0 : index
      %c0_20 = arith.constant 0 : index
      %29 = vector.load %arg1[%c0_19, %c0_20] : memref<8x16xf32, #tpu.memory_space<vmem>>, vector<8x16xf32>
      %c0_21 = arith.constant 0 : index
      %c0_22 = arith.constant 0 : index
      %30 = vector.load %arg2[%c0_21, %c0_22] : memref<16x128xf32, #tpu.memory_space<vmem>>, vector<16x128xf32>
      %cst_23 = arith.constant dense<0.000000e+00> : vector<8x128xf32>
      %31 = tpu.matmul %29, %30, %cst_23 {dimension_numbers = #tpu.dot_dimension_numbers<[1], [0], [0], [1], [0, 0, 1, 1], [], []>} : vector<8x16xf32>, vector<16x128xf32>, vector<8x128xf32> -> vector<8x128xf32>
      %cst_24 = arith.constant dense<0.000000e+00> : vector<128xf32>
      %32 = vector.multi_reduction <add>, %31, %cst_24 [0] : vector<8x128xf32> to vector<128xf32>
      %33 = vector.shape_cast %32 : vector<128xf32> to vector<1x128xf32>
      %cst_25 = arith.constant 8.000000e+00 : f32
      %34 = vector.broadcast %cst_25 : f32 to vector<1x128xf32>
      %35 = arith.divf %33, %34 : vector<1x128xf32>
      %36 = vector.broadcast %35 : vector<1x128xf32> to vector<8x128xf32>
      %37 = arith.subf %31, %36 : vector<8x128xf32>
      %38 = vector.broadcast %35 : vector<1x128xf32> to vector<8x128xf32>
      %39 = arith.subf %31, %38 : vector<8x128xf32>
      %40 = arith.mulf %37, %39 : vector<8x128xf32>
      %cst_26 = arith.constant dense<0.000000e+00> : vector<128xf32>
      %41 = vector.multi_reduction <add>, %40, %cst_26 [0] : vector<8x128xf32> to vector<128xf32>
      %42 = vector.shape_cast %41 : vector<128xf32> to vector<1x128xf32>
      %cst_27 = arith.constant 8.000000e+00 : f32
      %43 = vector.broadcast %cst_27 : f32 to vector<1x128xf32>
      %44 = arith.divf %42, %43 : vector<1x128xf32>
      %c0_28 = arith.constant 0 : index
      %c0_29 = arith.constant 0 : index
      %45 = vector.load %arg3[%c0_28, %c0_29] : memref<1x128xf32, #tpu.memory_space<vmem>>, vector<1x128xf32>
      %cst_30 = arith.constant 9.99999974E-6 : f32
      %46 = vector.broadcast %cst_30 : f32 to vector<1x128xf32>
      %47 = arith.addf %44, %46 : vector<1x128xf32>
      %48 = math.rsqrt %47 : vector<1x128xf32>
      %49 = arith.mulf %45, %48 : vector<1x128xf32>
      %c0_31 = arith.constant 0 : index
      %c0_32 = arith.constant 0 : index
      %50 = vector.load %arg4[%c0_31, %c0_32] : memref<1x128xf32, #tpu.memory_space<vmem>>, vector<1x128xf32>
      %51 = arith.mulf %35, %49 : vector<1x128xf32>
      %52 = arith.subf %50, %51 : vector<1x128xf32>
      %53 = vector.broadcast %49 : vector<1x128xf32> to vector<8x128xf32>
      %54 = arith.mulf %31, %53 : vector<8x128xf32>
      %55 = vector.broadcast %52 : vector<1x128xf32> to vector<8x128xf32>
      %56 = arith.addf %54, %55 : vector<8x128xf32>
      %cst_33 = arith.constant 1.000000e-01 : f32
      %57 = vector.broadcast %cst_33 : f32 to vector<8x128xf32>
      %58 = arith.mulf %57, %56 : vector<8x128xf32>
      %59 = arith.maximumf %56, %58 : vector<8x128xf32>
      %c0_34 = arith.constant 0 : index
      %c0_35 = arith.constant 0 : index
      %60 = vector.load %arg10[%c0_34, %c0_35] : memref<8x128xf32, #tpu.memory_space<vmem>>, vector<8x128xf32>
      tpu.vector_store %arg10[%c0_34, %c0_35], %59 {strides = array<i32>} : memref<8x128xf32, #tpu.memory_space<vmem>>, vector<8x128xf32>,
      %cst_36 = arith.constant -1.000000e+30 : f32
      %61 = vector.broadcast %cst_36 : f32 to vector<8x1xf32>
      %c0_37 = arith.constant 0 : index
      %c0_38 = arith.constant 0 : index
      %62 = vector.load %arg11[%c0_37, %c0_38] : memref<8x1xf32, #tpu.memory_space<vmem>>, vector<8x1xf32>
      tpu.vector_store %arg11[%c0_37, %c0_38], %61 {strides = array<i32>} : memref<8x1xf32, #tpu.memory_space<vmem>>, vector<8x1xf32>,
      %cst_39 = arith.constant 0.000000e+00 : f32
      %63 = vector.broadcast %cst_39 : f32 to vector<8x1xf32>
      %c0_40 = arith.constant 0 : index
      %c0_41 = arith.constant 0 : index
      %64 = vector.load %arg12[%c0_40, %c0_41] : memref<8x1xf32, #tpu.memory_space<vmem>>, vector<8x1xf32>
      tpu.vector_store %arg12[%c0_40, %c0_41], %63 {strides = array<i32>} : memref<8x1xf32, #tpu.memory_space<vmem>>, vector<8x1xf32>,
    } else {
    }
    %c0 = arith.constant 0 : index
    %c0_1 = arith.constant 0 : index
    %3 = vector.load %arg5[%c0, %c0_1] : memref<128x512xf32, #tpu.memory_space<vmem>>, vector<128x512xf32>
    %c0_2 = arith.constant 0 : index
    %c0_3 = arith.constant 0 : index
    %4 = vector.load %arg10[%c0_2, %c0_3] : memref<8x128xf32, #tpu.memory_space<vmem>>, vector<8x128xf32>
    %cst = arith.constant dense<0.000000e+00> : vector<8x512xf32>
    %5 = tpu.matmul %4, %3, %cst {dimension_numbers = #tpu.dot_dimension_numbers<[1], [0], [0], [1], [0, 0, 1, 1], [], []>} : vector<8x128xf32>, vector<128x512xf32>, vector<8x512xf32> -> vector<8x512xf32>
    %c0_4 = arith.constant 0 : index
    %c0_5 = arith.constant 0 : index
    %6 = vector.load %arg6[%c0_4, %c0_5] : memref<1x512xf32, #tpu.memory_space<vmem>>, vector<1x512xf32>
    %7 = vector.broadcast %6 : vector<1x512xf32> to vector<8x512xf32>
    %8 = arith.addf %5, %7 : vector<8x512xf32>
    %c0_6 = arith.constant 0 : index
    %c0_7 = arith.constant 0 : index
    %9 = vector.load %arg7[%c0_6, %c0_7] : memref<8x512xf32, #tpu.memory_space<vmem>>, vector<8x512xf32>
    tpu.vector_store %arg7[%c0_6, %c0_7], %8 {strides = array<i32>} : memref<8x512xf32, #tpu.memory_space<vmem>>, vector<8x512xf32>,
    %c0_8 = arith.constant 0 : index
    %c0_9 = arith.constant 0 : index
    %10 = vector.load %arg11[%c0_8, %c0_9] : memref<8x1xf32, #tpu.memory_space<vmem>>, vector<8x1xf32>
    %cst_10 = arith.constant dense<0xFF800000> : vector<8xf32>
    %11 = vector.multi_reduction <maximumf>, %8, %cst_10 [1] : vector<8x512xf32> to vector<8xf32>
    %12 = vector.shape_cast %11 : vector<8xf32> to vector<8x1xf32>
    %13 = arith.maximumf %10, %12 : vector<8x1xf32>
    %c0_11 = arith.constant 0 : index
    %c0_12 = arith.constant 0 : index
    %14 = vector.load %arg12[%c0_11, %c0_12] : memref<8x1xf32, #tpu.memory_space<vmem>>, vector<8x1xf32>
    %15 = arith.subf %10, %13 : vector<8x1xf32>
    %16 = math.exp %15 : vector<8x1xf32>
    %17 = arith.mulf %14, %16 : vector<8x1xf32>
    %18 = vector.broadcast %13 : vector<8x1xf32> to vector<8x512xf32>
    %19 = arith.subf %8, %18 : vector<8x512xf32>
    %20 = math.exp %19 : vector<8x512xf32>
    %cst_13 = arith.constant dense<0.000000e+00> : vector<8xf32>
    %21 = vector.multi_reduction <add>, %20, %cst_13 [1] : vector<8x512xf32> to vector<8xf32>
    %22 = vector.shape_cast %21 : vector<8xf32> to vector<8x1xf32>
    %23 = arith.addf %17, %22 : vector<8x1xf32>
    %c0_14 = arith.constant 0 : index
    %c0_15 = arith.constant 0 : index
    %24 = vector.load %arg12[%c0_14, %c0_15] : memref<8x1xf32, #tpu.memory_space<vmem>>, vector<8x1xf32>
    tpu.vector_store %arg12[%c0_14, %c0_15], %23 {strides = array<i32>} : memref<8x1xf32, #tpu.memory_space<vmem>>, vector<8x1xf32>,
    %c0_16 = arith.constant 0 : index
    %c0_17 = arith.constant 0 : index
    %25 = vector.load %arg11[%c0_16, %c0_17] : memref<8x1xf32, #tpu.memory_space<vmem>>, vector<8x1xf32>
    tpu.vector_store %arg11[%c0_16, %c0_17], %13 {strides = array<i32>} : memref<8x1xf32, #tpu.memory_space<vmem>>, vector<8x1xf32>,
    %c2_i32 = arith.constant 2 : i32
    %26 = arith.cmpi eq, %arg0, %c2_i32 : i32
    %27 = arith.extui %26 : i1 to i32
    %c0_i32_18 = arith.constant 0 : i32
    %28 = arith.cmpi ne, %27, %c0_i32_18 : i32
    scf.if %28 {
      %c0_19 = arith.constant 0 : index
      %c0_20 = arith.constant 0 : index
      %29 = vector.load %arg11[%c0_19, %c0_20] : memref<8x1xf32, #tpu.memory_space<vmem>>, vector<8x1xf32>
      %c0_21 = arith.constant 0 : index
      %c0_22 = arith.constant 0 : index
      %30 = vector.load %arg8[%c0_21, %c0_22] : memref<8x1xf32, #tpu.memory_space<vmem>>, vector<8x1xf32>
      tpu.vector_store %arg8[%c0_21, %c0_22], %29 {strides = array<i32>} : memref<8x1xf32, #tpu.memory_space<vmem>>, vector<8x1xf32>,
      %c0_23 = arith.constant 0 : index
      %c0_24 = arith.constant 0 : index
      %31 = vector.load %arg12[%c0_23, %c0_24] : memref<8x1xf32, #tpu.memory_space<vmem>>, vector<8x1xf32>
      %c0_25 = arith.constant 0 : index
      %c0_26 = arith.constant 0 : index
      %32 = vector.load %arg9[%c0_25, %c0_26] : memref<8x1xf32, #tpu.memory_space<vmem>>, vector<8x1xf32>
      tpu.vector_store %arg9[%c0_25, %c0_26], %31 {strides = array<i32>} : memref<8x1xf32, #tpu.memory_space<vmem>>, vector<8x1xf32>,
    } else {
    }
    return
  }
  func.func @transform_0(%arg0: i32) -> (i32, i32) {
    %c0_i32 = arith.constant 0 : i32
    %c0_i32_0 = arith.constant 0 : i32
    %c0_i32_1 = arith.constant 0 : i32
    return %c0_i32, %c0_i32_0 : i32, i32
  }
  func.func @transform_1(%arg0: i32) -> (i32, i32) {
    %c0_i32 = arith.constant 0 : i32
    %c0_i32_0 = arith.constant 0 : i32
    %c0_i32_1 = arith.constant 0 : i32
    return %c0_i32, %c0_i32_0 : i32, i32
  }
  func.func @transform_2(%arg0: i32) -> (i32, i32) {
    %c0_i32 = arith.constant 0 : i32
    %c0_i32_0 = arith.constant 0 : i32
    %c0_i32_1 = arith.constant 0 : i32
    return %c0_i32, %c0_i32_0 : i32, i32
  }
  func.func @transform_3(%arg0: i32) -> (i32, i32) {
    %c0_i32 = arith.constant 0 : i32
    %c0_i32_0 = arith.constant 0 : i32
    %c0_i32_1 = arith.constant 0 : i32
    return %c0_i32, %c0_i32_0 : i32, i32
  }
  func.func @transform_4(%arg0: i32) -> (i32, i32) {
    %c0_i32 = arith.constant 0 : i32
    %c0_i32_0 = arith.constant 0 : i32
    return %c0_i32, %arg0 : i32, i32
  }
  func.func @transform_5(%arg0: i32) -> (i32, i32) {
    %c0_i32 = arith.constant 0 : i32
    %c0_i32_0 = arith.constant 0 : i32
    return %c0_i32, %arg0 : i32, i32
  }
  func.func @transform_6(%arg0: i32) -> (i32, i32) {
    %c0_i32 = arith.constant 0 : i32
    %c0_i32_0 = arith.constant 0 : i32
    return %c0_i32, %arg0 : i32, i32
  }
  func.func @transform_7(%arg0: i32) -> (i32, i32) {
    %c0_i32 = arith.constant 0 : i32
    %c0_i32_0 = arith.constant 0 : i32
    %c0_i32_1 = arith.constant 0 : i32
    return %c0_i32, %c0_i32_0 : i32, i32
  }
  func.func @transform_8(%arg0: i32) -> (i32, i32) {
    %c0_i32 = arith.constant 0 : i32
    %c0_i32_0 = arith.constant 0 : i32
    %c0_i32_1 = arith.constant 0 : i32
    return %c0_i32, %c0_i32_0 : i32, i32
  }
}

</mosaic_0001>

<bundles_post_ra>
// kernel: tpu_custom_call.1
= control target key start
LH: loop header
LB: loop body
LE: loop exit
PB: predicated region body
PF: predicated region fallthrough
CT: control target
= control target key end

     0   :  { %s1640_s0 = inlined_call_operand.hbm [shape: f32[8,16], index: 0, kind: input, shape index: {}]   ;;  %s1641_s1 = inlined_call_operand.hbm [shape: f32[16,128], index: 1, kind: input, shape index: {}]   ;;  %s1642_s2 = inlined_call_operand.vmem [shape: f32[1,128], index: 2, kind: input, shape index: {}]   ;;  %s1643_s3 = inlined_call_operand.vmem [shape: f32[1,128], index: 3, kind: input, shape index: {}]   ;;  %s1644_s4 = inlined_call_operand.hbm [shape: f32[128,1536], index: 4, kind: input, shape index: {}]   ;;  %s1645_s5 = inlined_call_operand.vmem [shape: f32[1,1536], index: 5, kind: input, shape index: {}]   ;;  %s1646_s6 = inlined_call_operand.hbm [shape: f32[8,1536], index: 6, kind: output, shape index: {0}]   ;;  %s1647_s7 = inlined_call_operand.vmem [shape: f32[8,1], index: 7, kind: output, shape index: {1}]   ;;  %s1648_s8 = inlined_call_operand.vmem [shape: f32[8,1], index: 8, kind: output, shape index: {2}]  }
   0x1   :  { %1658 = sst [smem:[#allocation20_spill]] %s1640_s0 }
   0x2   :  { %14 = vsyncpa [#allocation6], 0 }
   0x3   :  { %15 = vsyncpa [#allocation9], 0 }
   0x4   :  { %16 = vsyncpa [#allocation7], 0 }
   0x5   :  { %18 = vsyncpa [#allocation7 + $0x1], 0  ;;  %s1308_s27 = smov 0   ;;  %s1310_s28 = smov 0  }
   0x6   :  { %s1312_s29 = smov 0   ;;  %s1314_s30 = smov 0  }
   0x7 LB: > { %1659 = sst [smem:[#allocation16_spill]] %s1234_s27  ;;  %s1329_s9 = sadd.s32 4294967295, %s1246_s30   ;;  %s1246_s30 = sphi %s1314_s30, %s1684_s30   ;;  %s1242_s29 = sphi %s1312_s29, %s1688_s29   ;;  %s1238_s28 = sphi %s1310_s28, %s1687_s28   ;;  %s1234_s27 = sphi %s1308_s27, %s1686_s27  }
   0x8   : > { %s894_s10 = sadd.s32 4294967294, %s1246_s30   ;;  %s1333_s11 = sadd.s32 1, %s1246_s30  }
   0x9   : > { %1660 = sst [smem:[#allocation17_spill]] %s1333_s11  ;;  %s115_s12 = sadd.s32 1, %s1242_s29 }
   0xa   : > { %s112_s13 = ssub.s32 %s1246_s30, %s1333_s11  ;;  %p122_p0 = scmp.ne.s32.totalorder %s1242_s29, %s1238_s28 }
   0xb   : > { %p113_p1 = scmp.eq.s32.totalorder %s112_s13, 0  ;;  %p123_p2 = scmp.eq.s32.totalorder %s1246_s30, 0 }
   0xc   : > { %p128_p3 = scmp.ne.s32.totalorder %s1238_s28, %s1234_s27  ;;  %p1649_p4 = scmp.eq.s32.totalorder %s1329_s9, 0 }
   0xd   : > { %s1345_s14 = scalar_select %p113_p1, %s1242_s29, %s115_s12  }
   0xe   : > { %p1347_p5 = por %p123_p2, %p122_p0  ;;  %p1353_p6 = por %p1649_p4, %p128_p3 }
   0xf   : > { %1661 = sst [smem:[#allocation18_spill]] %s1345_s14  ;;  %p178_p7 = scmp.eq.s32.totalorder %s1329_s9, 2 }
  0x10   : > { %s1663_s16 = scalar_select %p1353_p6, 1, 0 }
  0x11   : > { %p184_p8 = scmp.eq.s32.totalorder %s894_s10, 2  ;;  %p895_p9 = scmp.ge.s32.totalorder %s1246_s30, 1 }
  0x12   : > { %p233_p10 = scmp.lt.s32.totalorder %s1246_s30, 4  ;;  %p1360_p11 = por %p178_p7, %p122_p0 }
  0x13   : > { %p1364_p12 = por %p184_p8, %p128_p3  ;;  %s1248_s20 = smov [#allocation5]  }
  0x14   : > { %s1664_s17 = scalar_select %p1360_p11, 1, 0 }
  0x15   : > { %s1665_s18 = scalar_select %p1364_p12, 1, 0 }
  0x16   : > { %p1368_p13 = pnand %p895_p9, %p233_p10  ;;  %s246_s21 = sshll.u32 %s1248_s20, 4  ;;  %s247_s21 = int_to_ptr.vmem [resolvable:$true] %s246_s21 }
  0x17   : > { %1666 = sst [smem:[#allocation19_spill]] %s1665_s18  ;;  %p1024_p4 = scmp.lt.s32.totalorder %s1246_s30, 3 }
  0x18   : > { %s1667_s19 = scalar_select %p1368_p13, 1, 0 }
  0x19   : > { %p1007_p2 = pneg %p1368_p13  ;;  %p1668_p0 = scmp.eq.s32.totalorder %s1329_s9, 0 }
  0x1a   : > { %p1384_p3 = pnand %p1024_p4, %p1347_p5  ;;  %s1249_s24 = smov [#allocation8]  }
  0x1b   : > { %p1378_p7 = pnand %p1007_p2, %p1668_p0  ;;  %s256_s25 = sshll.u32 %s1249_s24, 4  ;;  %s1388_s25 = int_to_ptr.vmem [resolvable:$true] %s256_s25 }
  0x1c   : > { %s1670_s23 = scalar_select %p1384_p3, 1, 0 }
  0x1d   : > { %s1671_s0 = sld [smem:[#allocation20_spill]]  ;;  %p1088_p9 = pneg %p1378_p7 }
  0x23   : > { %s1086_s12 = scalar_lea.hbm %s1671_s0, 128 }
  0x24   : > { %p1087_p8 = scmp.ne.s32.totalorder %s1671_s0, %s1086_s12  ;;  %p1093_p10 = scmp.lt.u32.totalorder %s1086_s12, %s1671_s0 }
  0x26   : > { %p1089_p4 = pnand %p1088_p9, %p1087_p8 }
  0x28   : > { %p1090_p5 = pneg %p1089_p4 }
  0x2a   : > { %p1095_p2 = pnand %p1093_p10, %p1090_p5 }
  0x2c   : > { %1098 = shalt.err (!%p1095_p2)
}
  0x2d   : > { %s1099_s24 = scalar_lea.vmem %s247_s21, 128  ;;  %p1107_p11 = scmp.lt.s32.totalorder %s247_s21, %s247_s21 }
  0x2e   : > { %p1100_p0 = scmp.ne.s32.totalorder %s247_s21, %s1099_s24  ;;  %p1108_p6 = scmp.lt.s32.totalorder %s1099_s24, %s1099_s24 }
  0x30   : > { %p1102_p1 = pnand %p1100_p0, %p1088_p9  ;;  %p1109_p13 = por %p1108_p6, %p1107_p11 }
  0x32   : > { %p1103_p12 = pneg %p1102_p1 }
  0x34   : > { %p1110_p3 = pnand %p1109_p13, %p1103_p12 }
  0x36   : > { %1113 = shalt.err (!%p1110_p3)
}
  0x37   : > { %1010 = dma.hbm_to_vmem [thread:$0]  (!%p1378_p7), %s1671_s0, 128, %s247_s21, [#allocation6]  }
  0x38   : > { %s276_s14 = sand.u32 1, %s1246_s30   ;;  %s1114_s20 = scalar_lea.hbm %s1641_s1, 256 }
  0x39   : > { %p1115_p1 = scmp.ne.s32.totalorder %s1641_s1, %s1114_s20  ;;  %p1121_p12 = scmp.lt.u32.totalorder %s1114_s20, %s1641_s1 }
  0x3b   : > { %p1117_p6 = pnand %p1115_p1, %p1088_p9 }
  0x3d   : > { %p1118_p11 = pneg %p1117_p6 }
  0x3f   : > { %p1123_p13 = pnand %p1121_p12, %p1118_p11 }
  0x41   : > { %1126 = shalt.err (!%p1123_p13)
}
  0x42   : > { %s1127_s21 = scalar_lea.vmem %s1388_s25, 256  ;;  %p1135_p5 = scmp.lt.s32.totalorder %s1388_s25, %s1388_s25 }
  0x43   : > { %p1128_p3 = scmp.ne.s32.totalorder %s1388_s25, %s1127_s21  ;;  %p1136_p10 = scmp.lt.s32.totalorder %s1127_s21, %s1127_s21 }
  0x45   : > { %p1130_p8 = pnand %p1128_p3, %p1088_p9  ;;  %p1137_p2 = por %p1136_p10, %p1135_p5 }
  0x47   : > { %p1131_p4 = pneg %p1130_p8 }
  0x49   : > { %p1138_p0 = pnand %p1137_p2, %p1131_p4 }
  0x4b   : > { %1141 = shalt.err (!%p1138_p0)
}
  0x4c   : > { %s1250_s11 = smov 128   ;;  %s1251_s18 = smov 8  }
  0x4d   : > { %1013 = dma.hbm_to_vmem [thread:$0]  (!%p1378_p7), %s1641_s1, 256, %s1388_s25, [#allocation9], %s1250_s11, %s1250_s11, %s1251_s18  }
  0x4e   : > { %s278_s12 = sand.u32 1, %s1242_s29   ;;  %s916_s20 = sshll.u32 %s1246_s30, 9 }
  0x4f   : > { %s899_s13 = sshll.u32 %s278_s12, 9  ;;  %s1443_s21 = scalar_lea.hbm %s1644_s4, %s916_s20 }
  0x50   : > { %s280_s0 = scalar_lea.vmem [#allocation10], %s899_s13  ;;  %s1447_s22 = scalar_lea.sflag [#allocation6], %s276_s14 }
  0x51   : > { %s287_s27 = sshll.u32 %s280_s0, 4  ;;  %s1142_s26 = scalar_lea.hbm %s1443_s21, 8192  ;;  %s1445_s27 = int_to_ptr.vmem [resolvable:$true] %s287_s27 }
  0x52   : > { %p1143_p7 = scmp.ne.s32.totalorder %s1443_s21, %s1142_s26  ;;  %p1672_p9 = scmp.ne.s32.totalorder %s1670_s23, 0 }
  0x53   : > { %s1147_s18 = scalar_lea.hbm %s1644_s4, 24576  ;;  %p1148_p12 = scmp.lt.u32.totalorder %s1443_s21, %s1644_s4 }
  0x54   : > { %p1144_p1 = pneg %p1672_p9  ;;  %p1149_p13 = scmp.lt.u32.totalorder %s1147_s18, %s1142_s26 }
  0x55   : > { %p1151_p8 = scmp.lt.u32.totalorder %s1142_s26, %s1443_s21 }
  0x56   : > { %p1145_p6 = pnand %p1144_p1, %p1143_p7  ;;  %p1150_p3 = por %p1149_p13, %p1148_p12 }
  0x58   : > { %p1146_p11 = pneg %p1145_p6  ;;  %p1152_p4 = por %p1151_p8, %p1150_p3 }
  0x5a   : > { %p1153_p5 = pnand %p1152_p4, %p1146_p11 }
  0x5c   : > { %1156 = shalt.err (!%p1153_p5)
}
  0x5d   : > { %s1157_s0 = scalar_lea.vmem %s1445_s27, 8192  ;;  %s1252_s14 = smov [#allocation10]  }
  0x5e   : > { %p1158_p10 = scmp.ne.s32.totalorder %s1445_s27, %s1157_s0  ;;  %s1162_s13 = sshll.u32 %s1252_s14, 4  ;;  %s1163_s13 = int_to_ptr.vmem [resolvable:$false] %s1162_s13 }
  0x5f   : > { %s1164_s20 = scalar_lea.vmem %s1163_s13, 16384  ;;  %p1165_p7 = scmp.lt.s32.totalorder %s1445_s27, %s1163_s13 }
  0x60   : > { %p1160_p2 = pnand %p1158_p10, %p1144_p1  ;;  %p1166_p6 = scmp.lt.s32.totalorder %s1164_s20, %s1157_s0 }
  0x62   : > { %p1161_p0 = pneg %p1160_p2  ;;  %p1167_p12 = por %p1166_p6, %p1165_p7 }
  0x64   : > { %p1168_p13 = pnand %p1167_p12, %p1161_p0 }
  0x66   : > { %1171 = shalt.err (!%p1168_p13)
}
  0x67   : > { %s1253_s15 = smov 1536   ;;  %s1254_s24 = smov 512  }
  0x68   : > { %s1255_s26 = smov 32   ;;  %p1673_p1 = scmp.ne.s32.totalorder %s1667_s19, 0 }
  0x69   : > { %1017 = dma.hbm_to_vmem [thread:$0]  (!%p1672_p9), %s1443_s21, 8192, %s1445_s27, %s1447_s22, %s1253_s15, %s1254_s24, %s1255_s26  }
  0x6a   : > { %307 = sbr.rel (%p1673_p1) target bundleno = 1132 (0x46c), region = 44  ;;  %p1674_p11 = scmp.eq.s32.totalorder (!%p1673_p1), %s1329_s9, 0 }
  0x71   : > { %1217 = dma.done.wait (%p1674_p11), [#allocation6], 128   ;;  %p1675_p3 = pmov %p1674_p11 }
  0x73   : > { %1219 = vsyncadd (%p1675_p3), [#allocation6], 4294967168  ;;  %p1676_p8 = pmov %p1675_p3 }
  0x74   : > { %p1677_p4 = pmov %p1675_p3 }
  0x75   : > { %1221 = dma.done.wait (%p1676_p8), [#allocation9], 256  }
  0x76   : > { %1223 = vsyncadd (%p1677_p4), [#allocation9], 4294967040  ;;  %s317_s23 = sand.u32 1, %s1329_s9   ;;  %s1487_s27 = sand.u32 1, %s1238_s28  }
  0x77   : > { %s905_s19 = sshll.u32 %s1487_s27, 9  ;;  %s318_s21 = scalar_lea.sflag [#allocation6], %s317_s23 }
  0x78   : > { %s1490_s22 = scalar_lea.vmem [#allocation10], %s905_s19  ;;  %p1678_p9 = scmp.ne.s32.totalorder %s1663_s16, 0 }
  0x7a   : > { %1225 = dma.done.wait (%p1678_p9), %s318_s21, 8192  }
  0x7b   : > { %1227 = vsyncadd (%p1678_p9), %s318_s21, 4294959104  ;;  %s906_s25 = sshll.u32 %s1487_s27, 5  ;;  %s907_s11 = sshll.u32 %s1329_s9, 2 }
  0x7c   : > { %p360_p5 = scmp.lt.s32.totalorder %s907_s11, 11  ;;  %s1504_s0 = scalar_lea.vmem [#allocation11], %s906_s25 }
  0x7d   : > { %p1679_p10 = scmp.ne.s32.totalorder %s1329_s9, 0 }
  0x7e   : > { %s1690_s11 = smov (!%p360_p5, %s907_s11), 11  ;;  %v370_v0 = vld [vmem:[#allocation8] sm:$0xff] (!%p1679_p10)  ;;  %v371_v1 = vld [vmem:[#allocation8 + $0x8] sm:$0xff] (!%p1679_p10)  ;;  %vm487_vm0 = vcmask (!%p1679_p10), 7168   ;;  %v1256_v2 = vmov (!%p1679_p10), 0.0|0.0   ;;  %vm1257_vm1 = vmmov (!%p1679_p10), 0   ;;  %v471_v26 = vlaneseq (!%p1679_p10) }
  0x7f   : > { %s362_s12 = scalar_lea.vmem %s1645_s5, %s1690_s11  ;;  %368 = sbr.rel (%p1679_p10) target bundleno = 404 (0x194), region = 60  ;;  %928 = vmatprep.subr.bf16.mxu0 (!%p1679_p10), %v1256_v2  ;;  %v929_v3 = vpack.c.bf16 (!%p1679_p10), %v371_v1, %v370_v0  ;;  %v1258_v4 = vmov (!%p1679_p10), 0.0   ;;  %v1259_v5 = vmov (!%p1679_p10), -1e+30   ;;  %v369_v6 = vld [vmem:[#allocation5] sm:$0xff] (!%p1679_p10)  ;;  %vm372_vm2 = vcmask (!%p1679_p10), 130048  }
  0x80   : > { %925 = vmatprep.mubr.msk.f32.mxu0 (!%p1679_p10), %vm1257_vm1, %v1258_v4  ;;  %489 = vst.msk [vmem:[#allocation4] sm:$0xff] (!%p1679_p10), %vm487_vm0, %v1258_v4  ;;  %488 = vst.msk [vmem:[#allocation3] sm:$0xff] (!%p1679_p10), %vm487_vm0, %v1259_v5  ;;  %v472_v27 = vshrl.u32 (!%p1679_p10), %v471_v26, 7  ;;  %v463_v28 = vld [vmem:[%s1642_s2] sm:$0x1] (!%p1679_p10) }
  0x81   : > { %930 = vmatpush3.bf16.msra.mxu0 (!%p1679_p10), %v929_v3  ;;  %v467_v32 = vld [vmem:[%s1643_s3] sm:$0x1] (!%p1679_p10) }
  0x82   : > { %v473_v29 = vsub.s32 (!%p1679_p10), 0, %v472_v27 }
  0x84   : > { %926 = vmatmul.mubr.msk.f32.vlgmr.msra.gmra.mrb[0].mxu0 (!%p1679_p10), %vm372_vm2, %v369_v6 }
 0x157   : > { %v442_v7 = vpop.f32.mrb[0].mxu0 }
 0x158   : > { %v446_v8 = vrot.slane %v442_v7, 4  ;;  %v927_v9 = vpop.f32.mrb[1].mxu0 }
 0x15a   : > { %v447_v10 = vadd.f32 %v446_v8, %v442_v7 }
 0x15c   : > { %v448_v11 = vrot.slane %v447_v10, 2 }
 0x15e   : > { %v449_v12 = vadd.f32 %v448_v11, %v447_v10 }
 0x160   : > { %v450_v13 = vrot.slane %v449_v12, 1 }
 0x162   : > { %v451_v14 = vadd.f32 %v450_v13, %v449_v12 }
 0x164   : > { %v453_v15 = vmul.f32 0.125, %v451_v14 }
 0x166   : > { %v454_v16 = vsub.f32 %v442_v7, %v453_v15 }
 0x168   : > { %v455_v17 = vmul.f32 %v454_v16, %v454_v16 }
 0x16a   : > { %v456_v18 = vrot.slane %v455_v17, 4 }
 0x16c   : > { %v457_v19 = vadd.f32 %v456_v18, %v455_v17 }
 0x16e   : > { %v458_v20 = vrot.slane %v457_v19, 2 }
 0x170   : > { %v459_v21 = vadd.f32 %v458_v20, %v457_v19 }
 0x172   : > { %v460_v22 = vrot.slane %v459_v21, 1 }
 0x174   : > { %v461_v23 = vadd.f32 %v460_v22, %v459_v21 }
 0x176   : > { %v462_v24 = vmul.f32 0.125, %v461_v23 }
 0x178   : > { %v464_v25 = vadd.f32 1e-05, %v462_v24 }
 0x17a   : > { %1073 = vrsqrt.f32 %v464_v25 }
 0x184   : > { %v1074_v30 = vpop.eup %1073 }
 0x185   : > { %v466_v31 = vmul.f32 %v1074_v30, %v463_v28 }
 0x187   : > { %v468_v33 = vmul.f32 %v466_v31, %v453_v15  ;;  %v474_v34 = vrot.slane %v466_v31, %v473_v29 }
 0x189   : > { %v469_v35 = vsub.f32 %v467_v32, %v468_v33  ;;  %v476_v36 = vmul.f32 %v474_v34, %v442_v7 }
 0x18b   : > { %v481_v37 = vrot.slane %v469_v35, %v473_v29 }
 0x18d   : > { %v483_v38 = vadd.f32 %v481_v37, %v476_v36 }
 0x18f   : > { %v484_v39 = vmul.f32 0.1, %v483_v38 }
 0x191   : > { %v485_v40 = vmax.f32 %v483_v38, %v484_v39 }
 0x193   : > { %486 = vst [vmem:[#allocation2] sm:$0xff] %v485_v40 }
 0x194 PF: > { %v491_v41 = vld [vmem:[%s1490_s22 + $0x8] sm:$0xff]  ;;  %v493_v43 = vld [vmem:[%s1490_s22 + $0x18] sm:$0xff]  ;;  %v490_v46 = vld [vmem:[%s1490_s22] sm:$0xff]  ;;  %v1260_v48 = vmov 0.0   ;;  %vm758_vm3 = vcmask 7168   ;;  %p910_p2 = scmp.ne.s32.totalorder %s1329_s9, 2 }
 0x195   : > { %v495_v42 = vld [vmem:[%s1490_s22 + $0x28] sm:$0xff]  ;;  %v497_v45 = vld [vmem:[%s1490_s22 + $0x38] sm:$0xff]  ;;  %v494_v47 = vld [vmem:[%s1490_s22 + $0x20] sm:$0xff]  ;;  %641 = vmatprep.mubr.f32.mxu0 %v1260_v48  ;;  %712 = vmatprep.mubr.f32.mxu1 %v1260_v48 }
 0x196   : > { %v931_v44 = vpack.c.bf16 %v495_v42, %v491_v41  ;;  %v963_v49 = vpack.c.bf16 %v497_v45, %v493_v43  ;;  %v933_v50 = vpack.c.bf16 %v494_v47, %v490_v46  ;;  %v492_v51 = vld [vmem:[%s1490_s22 + $0x10] sm:$0xff]  ;;  %v499_v53 = vld [vmem:[%s1490_s22 + $0x48] sm:$0xff]  ;;  %v501_v56 = vld [vmem:[%s1490_s22 + $0x58] sm:$0xff] }
 0x197   : > { %v496_v52 = vld [vmem:[%s1490_s22 + $0x30] sm:$0xff]  ;;  %v503_v55 = vld [vmem:[%s1490_s22 + $0x68] sm:$0xff]  ;;  %v505_v57 = vld [vmem:[%s1490_s22 + $0x78] sm:$0xff] }
 0x198   : > { %932 = vmatprep.subr.bf16.mxu0 %v931_v44  ;;  %v965_v54 = vpack.c.bf16 %v496_v52, %v492_v51  ;;  %964 = vmatprep.subr.bf16.mxu1 %v963_v49  ;;  %v935_v58 = vpack.c.bf16 %v503_v55, %v499_v53  ;;  %v967_v59 = vpack.c.bf16 %v505_v57, %v501_v56  ;;  %v498_v60 = vld [vmem:[%s1490_s22 + $0x40] sm:$0xff]  ;;  %v500_v62 = vld [vmem:[%s1490_s22 + $0x50] sm:$0xff]  ;;  %v507_v1 = vld [vmem:[%s1490_s22 + $0x88] sm:$0xff] }
 0x199   : > { %934 = vmatpush1.bf16.msra.mxu0 %v933_v50  ;;  %v502_v61 = vld [vmem:[%s1490_s22 + $0x60] sm:$0xff]  ;;  %v504_v0 = vld [vmem:[%s1490_s22 + $0x70] sm:$0xff]  ;;  %v511_v2 = vld [vmem:[%s1490_s22 + $0xa8] sm:$0xff] }
 0x19a   : > { %966 = vmatpush1.bf16.msra.mxu1 %v965_v54  ;;  %v937_v63 = vpack.c.bf16 %v502_v61, %v498_v60  ;;  %936 = vmatprep.subr.bf16.mxu0 %v935_v58  ;;  %v969_v3 = vpack.c.bf16 %v504_v0, %v500_v62  ;;  %v939_v4 = vpack.c.bf16 %v511_v2, %v507_v1  ;;  %v509_v5 = vld [vmem:[%s1490_s22 + $0x98] sm:$0xff]  ;;  %v506_v7 = vld [vmem:[%s1490_s22 + $0x80] sm:$0xff]  ;;  %v508_v10 = vld [vmem:[%s1490_s22 + $0x90] sm:$0xff] }
 0x19b   : > { %968 = vmatprep.subr.bf16.mxu1 %v967_v59  ;;  %v513_v6 = vld [vmem:[%s1490_s22 + $0xb8] sm:$0xff]  ;;  %v510_v9 = vld [vmem:[%s1490_s22 + $0xa0] sm:$0xff]  ;;  %v512_v11 = vld [vmem:[%s1490_s22 + $0xb0] sm:$0xff] }
 0x19c   : > { %v971_v8 = vpack.c.bf16 %v513_v6, %v509_v5  ;;  %v941_v12 = vpack.c.bf16 %v510_v9, %v506_v7  ;;  %v515_v13 = vld [vmem:[%s1490_s22 + $0xc8] sm:$0xff]  ;;  %v517_v15 = vld [vmem:[%s1490_s22 + $0xd8] sm:$0xff]  ;;  %v973_v16 = vpack.c.bf16 %v512_v11, %v508_v10  ;;  %v514_v19 = vld [vmem:[%s1490_s22 + $0xc0] sm:$0xff]  ;;  %v557_v11 = vlaneseq }
 0x19d   : > { %938 = vmatpush1.bf16.msra.mxu0 %v937_v63  ;;  %v519_v14 = vld [vmem:[%s1490_s22 + $0xe8] sm:$0xff]  ;;  %v521_v18 = vld [vmem:[%s1490_s22 + $0xf8] sm:$0xff]  ;;  %v518_v20 = vld [vmem:[%s1490_s22 + $0xe0] sm:$0xff] }
 0x19e   : > { %970 = vmatpush1.bf16.msra.mxu1 %v969_v3  ;;  %940 = vmatprep.subr.bf16.mxu0 %v939_v4  ;;  %v943_v17 = vpack.c.bf16 %v519_v14, %v515_v13  ;;  %v975_v21 = vpack.c.bf16 %v521_v18, %v517_v15  ;;  %v516_v22 = vld [vmem:[%s1490_s22 + $0xd0] sm:$0xff]  ;;  %v523_v24 = vld [vmem:[%s1490_s22 + $0x108] sm:$0xff]  ;;  %v525_v26 = vld [vmem:[%s1490_s22 + $0x118] sm:$0xff]  ;;  %v945_v28 = vpack.c.bf16 %v518_v20, %v514_v19 }
 0x19f   : > { %972 = vmatprep.subr.bf16.mxu1 %v971_v8  ;;  %v520_v23 = vld [vmem:[%s1490_s22 + $0xf0] sm:$0xff]  ;;  %v527_v25 = vld [vmem:[%s1490_s22 + $0x128] sm:$0xff]  ;;  %v529_v27 = vld [vmem:[%s1490_s22 + $0x138] sm:$0xff] }
 0x1a0   : > { %v977_v29 = vpack.c.bf16 %v520_v23, %v516_v22  ;;  %v947_v30 = vpack.c.bf16 %v527_v25, %v523_v24  ;;  %v522_v31 = vld [vmem:[%s1490_s22 + $0x100] sm:$0xff]  ;;  %v524_v33 = vld [vmem:[%s1490_s22 + $0x110] sm:$0xff]  ;;  %v979_v34 = vpack.c.bf16 %v529_v27, %v525_v26  ;;  %v531_v36 = vld [vmem:[%s1490_s22 + $0x148] sm:$0xff] }
 0x1a1   : > { %942 = vmatpush1.bf16.msra.mxu0 %v941_v12  ;;  %v526_v32 = vld [vmem:[%s1490_s22 + $0x120] sm:$0xff]  ;;  %v528_v35 = vld [vmem:[%s1490_s22 + $0x130] sm:$0xff]  ;;  %v535_v37 = vld [vmem:[%s1490_s22 + $0x168] sm:$0xff]  ;;  %v558_v12 = vshrl.u32 %v557_v11, 7 }
 0x1a2   : > { %974 = vmatpush1.bf16.msra.mxu1 %v973_v16  ;;  %944 = vmatprep.subr.bf16.mxu0 %v943_v17  ;;  %v533_v38 = vld [vmem:[%s1490_s22 + $0x158] sm:$0xff]  ;;  %v949_v40 = vpack.c.bf16 %v526_v32, %v522_v31  ;;  %v981_v41 = vpack.c.bf16 %v528_v35, %v524_v33  ;;  %v951_v42 = vpack.c.bf16 %v535_v37, %v531_v36  ;;  %v530_v43 = vld [vmem:[%s1490_s22 + $0x140] sm:$0xff]  ;;  %v532_v45 = vld [vmem:[%s1490_s22 + $0x150] sm:$0xff]  ;;  %v1261_v33 = vmov 0  }
 0x1a3   : > { %976 = vmatprep.subr.bf16.mxu1 %v975_v21  ;;  %v537_v39 = vld [vmem:[%s1490_s22 + $0x178] sm:$0xff]  ;;  %v534_v44 = vld [vmem:[%s1490_s22 + $0x160] sm:$0xff]  ;;  %v536_v47 = vld [vmem:[%s1490_s22 + $0x170] sm:$0xff]  ;;  %v559_v13 = vsub.s32 0, %v558_v12  ;;  %v567_v15 = vsub.s32 2, %v558_v12  ;;  %v563_v16 = vsub.s32 1, %v558_v12  ;;  %1075 = vset.pattern.permute.xlu0 %v1261_v33 }
 0x1a4   : > { %v983_v46 = vpack.c.bf16 %v537_v39, %v533_v38  ;;  %v539_v48 = vld [vmem:[%s1490_s22 + $0x188] sm:$0xff]  ;;  %v541_v50 = vld [vmem:[%s1490_s22 + $0x198] sm:$0xff]  ;;  %v953_v52 = vpack.c.bf16 %v534_v44, %v530_v43  ;;  %v985_v53 = vpack.c.bf16 %v536_v47, %v532_v45  ;;  %v538_v55 = vld [vmem:[%s1490_s22 + $0x180] sm:$0xff]  ;;  %v571_v17 = vsub.s32 3, %v558_v12 }
 0x1a5   : > { %946 = vmatpush1.bf16.msra.mxu0 %v945_v28  ;;  %v543_v49 = vld [vmem:[%s1490_s22 + $0x1a8] sm:$0xff]  ;;  %v545_v51 = vld [vmem:[%s1490_s22 + $0x1b8] sm:$0xff]  ;;  %v542_v56 = vld [vmem:[%s1490_s22 + $0x1a0] sm:$0xff] }
 0x1a6   : > { %978 = vmatpush1.bf16.msra.mxu1 %v977_v29  ;;  %948 = vmatprep.subr.bf16.mxu0 %v947_v30  ;;  %v955_v54 = vpack.c.bf16 %v543_v49, %v539_v48  ;;  %v540_v57 = vld [vmem:[%s1490_s22 + $0x190] sm:$0xff]  ;;  %v987_v58 = vpack.c.bf16 %v545_v51, %v541_v50  ;;  %v547_v60 = vld [vmem:[%s1490_s22 + $0x1c8] sm:$0xff]  ;;  %v549_v62 = vld [vmem:[%s1490_s22 + $0x1d8] sm:$0xff]  ;;  %v957_v0 = vpack.c.bf16 %v542_v56, %v538_v55 }
 0x1a7   : > { %980 = vmatprep.subr.bf16.mxu1 %v979_v34  ;;  %v544_v59 = vld [vmem:[%s1490_s22 + $0x1b0] sm:$0xff]  ;;  %v551_v61 = vld [vmem:[%s1490_s22 + $0x1e8] sm:$0xff]  ;;  %v553_v63 = vld [vmem:[%s1490_s22 + $0x1f8] sm:$0xff] }
 0x1a8   : > { %v989_v1 = vpack.c.bf16 %v544_v59, %v540_v57  ;;  %v959_v2 = vpack.c.bf16 %v551_v61, %v547_v60  ;;  %v546_v3 = vld [vmem:[%s1490_s22 + $0x1c0] sm:$0xff]  ;;  %v991_v5 = vpack.c.bf16 %v553_v63, %v549_v62  ;;  %v548_v6 = vld [vmem:[%s1490_s22 + $0x1d0] sm:$0xff]  ;;  %v723_v34 = vld [vmem:[#allocation3] sm:$0xff] }
 0x1a9   : > { %950 = vmatpush1.bf16.msra.mxu0 %v949_v40  ;;  %v550_v4 = vld [vmem:[%s1490_s22 + $0x1e0] sm:$0xff]  ;;  %v552_v7 = vld [vmem:[%s1490_s22 + $0x1f0] sm:$0xff] }
 0x1aa   : > { %982 = vmatpush1.bf16.msra.mxu1 %v981_v41  ;;  %952 = vmatprep.subr.bf16.mxu0 %v951_v42  ;;  %v961_v8 = vpack.c.bf16 %v550_v4, %v546_v3  ;;  %v993_v9 = vpack.c.bf16 %v552_v7, %v548_v6  ;;  %v554_v10 = vld [vmem:[#allocation2] sm:$0xff]  ;;  %v730_v56 = vld [vmem:[#allocation4] sm:$0xff] }
 0x1ab   : > { %984 = vmatprep.subr.bf16.mxu1 %v983_v46  ;;  %v555_v14 = vld [vmem:[%s362_s12] sm:$0xf] }
 0x1ac   : > { %v560_v18 = vrot.slane %v555_v14, %v559_v13  ;;  %v568_v19 = vrot.slane %v555_v14, %v567_v15  ;;  %v564_v20 = vrot.slane %v555_v14, %v563_v16  ;;  %v572_v21 = vrot.slane %v555_v14, %v571_v17 }
 0x1ad   : > { %954 = vmatpush1.bf16.msra.mxu0 %v953_v52 }
 0x1ae   : > { %986 = vmatpush1.bf16.msra.mxu1 %v985_v53  ;;  %956 = vmatprep.subr.bf16.mxu0 %v955_v54 }
 0x1af   : > { %988 = vmatprep.subr.bf16.mxu1 %v987_v58 }
 0x1b1   : > { %958 = vmatpush1.bf16.msra.mxu0 %v957_v0 }
 0x1b2   : > { %990 = vmatpush1.bf16.msra.mxu1 %v989_v1  ;;  %960 = vmatprep.subr.bf16.mxu0 %v959_v2 }
 0x1b3   : > { %992 = vmatprep.subr.bf16.mxu1 %v991_v5 }
 0x1b5   : > { %962 = vmatpush1.bf16.msra.mxu0 %v961_v8 }
 0x1b6   : > { %994 = vmatpush1.bf16.msra.mxu1 %v993_v9 }
 0x1b8   : > { %642 = vmatmul.mubr.f32.vlgmr.msra.gmra.mrb[0].mxu0 %v554_v10 }
 0x1b9   : > { %713 = vmatmul.mubr.f32.vlgmr.msra.gmra.mrb[0].mxu1 %v554_v10 }
 0x28b   : > { %v643_v22 = vpop.f32.mrb[0].mxu0 }
 0x28c   : > { %v644_v23 = vadd.f32 %v643_v22, %v560_v18  ;;  %v714_v24 = vpop.f32.mrb[0].mxu1  ;;  %v645_v25 = vpop.f32.mrb[1].mxu0 }
 0x28d   : > { %v715_v26 = vadd.f32 %v714_v24, %v568_v19  ;;  %v646_v27 = vadd.f32 %v645_v25, %v564_v20  ;;  %v716_v28 = vpop.f32.mrb[1].mxu1 }
 0x28e   : > { %719 = vst [vmem:[%s1504_s0] sm:$0xff] %v644_v23  ;;  %v717_v29 = vadd.f32 %v716_v28, %v572_v21 }
 0x28f   : > { %721 = vst [vmem:[%s1504_s0 + $0x10] sm:$0xff] %v715_v26  ;;  %720 = vst [vmem:[%s1504_s0 + $0x8] sm:$0xff] %v646_v27  ;;  %v724_v30 = vmax.f32 %v644_v23, %v646_v27 }
 0x290   : > { %722 = vst [vmem:[%s1504_s0 + $0x18] sm:$0xff] %v717_v29  ;;  %v725_v31 = vmax.f32 %v715_v26, %v717_v29 }
 0x292   : > { %v726_v32 = vmax.f32 %v724_v30, %v725_v31 }
 0x294   : > { %727 = vmax.xlane.f32.xlu0 %v726_v32 }
 0x321   : > { %v728_v35 = vpop.xlane.xlu0 %727 }
 0x322   : > { %v729_v36 = vmax.f32 %v723_v34, %v728_v35 }
 0x324   : > { %v731_v37 = vsub.f32 %v723_v34, %v729_v36  ;;  %760 = vst.msk [vmem:[#allocation3] sm:$0xff] %vm758_vm3, %v729_v36  ;;  %737 = vperm.xlu0 %1075, %v729_v36  }
 0x326   : > { %v732_v54 = vmul.f32 1.442695, %v731_v37 }
 0x32b   : > { %v765_v60 = vld [vmem:[#allocation3] sm:$0xff] (!%p910_p2) }
 0x32c   : > { %766 = vst.msk [vmem:[%s1647_s7] sm:$0xff] (!%p910_p2), %vm758_vm3, %v765_v60 }
 0x3a3   : > { %v738_v38 = vpop.permute.xlu0 %737 }
 0x3a4   : > { %v740_v39 = vsub.f32 %v644_v23, %v738_v38  ;;  %v741_v40 = vsub.f32 %v646_v27, %v738_v38  ;;  %v742_v41 = vsub.f32 %v715_v26, %v738_v38  ;;  %v743_v42 = vsub.f32 %v717_v29, %v738_v38 }
 0x3a6   : > { %v744_v43 = vmul.f32 1.442695, %v740_v39  ;;  %v746_v44 = vmul.f32 1.442695, %v741_v40  ;;  %v748_v45 = vmul.f32 1.442695, %v742_v41 }
 0x3a7   : > { %v750_v46 = vmul.f32 1.442695, %v743_v42 }
 0x3a8   : > { %1076 = vpow2.f32 %v744_v43 }
 0x3a9   : > { %1078 = vpow2.f32 %v746_v44 }
 0x3aa   : > { %1080 = vpow2.f32 %v748_v45 }
 0x3ab   : > { %1082 = vpow2.f32 %v750_v46 }
 0x3ac   : > { %1084 = vpow2.f32 %v732_v54 }
 0x3b2   : > { %v1077_v47 = vpop.eup %1076 }
 0x3b3   : > { %v1079_v48 = vpop.eup %1078 }
 0x3b4   : > { %v752_v49 = vadd.f32 %v1079_v48, %v1077_v47  ;;  %v1081_v50 = vpop.eup %1080 }
 0x3b5   : > { %v1083_v52 = vpop.eup %1082 }
 0x3b6   : > { %v753_v51 = vadd.f32 %v1081_v50, %v752_v49  ;;  %v1085_v55 = vpop.eup %1084 }
 0x3b7   : > { %v734_v57 = vmul.f32 %v1085_v55, %v730_v56 }
 0x3b8   : > { %v754_v53 = vadd.f32 %v1083_v52, %v753_v51 }
 0x3ba   : > { %755 = vadd.xlane.f32.xlu1 %v754_v53 }
 0x444   : > { %764 = sbr.rel (%p910_p2) target bundleno = 1107 (0x453), region = 64 }
 0x447   : > { %v756_v58 = vpop.xlane.xlu1 %755 }
 0x448   : > { %v757_v59 = vadd.f32 %v756_v58, %v734_v57 }
 0x44a   : > { %759 = vst.msk [vmem:[#allocation4] sm:$0xff] %vm758_vm3, %v757_v59 }
 0x451   : > { %v767_v61 = vld [vmem:[#allocation4] sm:$0xff] }
 0x452   : > { %768 = vst.msk [vmem:[%s1648_s8] sm:$0xff] %vm758_vm3, %v767_v61 }
 0x453 PF: > { %s917_s22 = sshll.u32 %s1329_s9, 9  ;;  %s784_s10 = sshll.u32 %s1504_s0, 4  ;;  %s785_s10 = int_to_ptr.vmem [resolvable:$true] %s784_s10 }
 0x454   : > { %s1602_s18 = scalar_lea.hbm %s1646_s6, %s917_s22  ;;  %s770_s12 = scalar_lea.sflag [#allocation7], %s1487_s27 }
 0x455   : > { %s1172_s16 = scalar_lea.vmem %s785_s10, 512  ;;  %p1680_p7 = scmp.ne.s32.totalorder %s1664_s17, 0 }
 0x456   : > { %p1173_p0 = scmp.ne.s32.totalorder %s785_s10, %s1172_s16  ;;  %s1262_s14 = smov [#allocation11]  }
 0x457   : > { %s1176_s13 = sshll.u32 %s1262_s14, 4  ;;  %s1177_s13 = int_to_ptr.vmem [resolvable:$false] %s1176_s13 }
 0x458   : > { %p1174_p6 = pnand %p1173_p0, %p1680_p7  ;;  %s1178_s20 = scalar_lea.vmem %s1177_s13, 1024 }
 0x459   : > { %p1179_p13 = scmp.lt.s32.totalorder %s785_s10, %s1177_s13  ;;  %p1180_p1 = scmp.lt.s32.totalorder %s1178_s20, %s1172_s16 }
 0x45a   : > { %p1175_p12 = pneg %p1174_p6 }
 0x45b   : > { %p1181_p11 = por %p1180_p1, %p1179_p13 }
 0x45d   : > { %p1182_p3 = pnand %p1181_p11, %p1175_p12 }
 0x45f   : > { %1185 = shalt.err (!%p1182_p3)
}
 0x460   : > { %s1186_s9 = scalar_lea.hbm %s1602_s18, 512  ;;  %s1190_s15 = scalar_lea.hbm %s1646_s6, 1536 }
 0x461   : > { %p1187_p8 = scmp.ne.s32.totalorder %s1602_s18, %s1186_s9  ;;  %p1191_p5 = scmp.lt.u32.totalorder %s1602_s18, %s1646_s6 }
 0x462   : > { %p1192_p10 = scmp.lt.u32.totalorder %s1190_s15, %s1186_s9  ;;  %p1194_p0 = scmp.lt.u32.totalorder %s1186_s9, %s1602_s18 }
 0x463   : > { %p1188_p4 = pnand %p1187_p8, %p1680_p7 }
 0x464   : > { %p1193_p2 = por %p1192_p10, %p1191_p5 }
 0x465   : > { %p1189_p9 = pneg %p1188_p4 }
 0x466   : > { %p1195_p6 = por %p1194_p0, %p1193_p2 }
 0x468   : > { %p1196_p12 = pnand %p1195_p6, %p1189_p9 }
 0x46a   : > { %1199 = shalt.err (!%p1196_p12)
}
 0x46b   : > { %1005 = dma.vmem_to_hbm [thread:$0]  (%p1680_p7), %s785_s10, 512, %s1602_s18, %s770_s12  }
 0x46c PF: > { %s1681_s23 = sld [smem:[#allocation16_spill]]  ;;  %s1682_s19 = sld [smem:[#allocation19_spill]] }
 0x46d   : > { %p1027_p13 = scmp.ge.s32.totalorder %s1246_s30, 2 }
 0x472   : > { %s808_s21 = sand.u32 1, %s1681_s23   ;;  %p1683_p1 = scmp.ne.s32.totalorder %s1682_s19, 0 }
 0x473   : > { %s809_s22 = scalar_lea.sflag [#allocation7], %s808_s21 }
 0x474   : > { %p1019_p11 = pnand %p1027_p13, %p1683_p1 }
 0x476   : > { %1229 = dma.done.wait (!%p1019_p11), %s809_s22, 512  }
 0x477   : > { %1231 = vsyncadd (!%p1019_p11), %s809_s22, 4294966784  ;;  %s1684_s30 = sld [smem:[#allocation17_spill]]  ;;  %s1685_s25 = sld [smem:[#allocation18_spill]] }
 0x478   : > { %s1686_s27 = smov %s1238_s28  ;;  %s1687_s28 = smov %s1242_s29 }
 0x47d   : > { %p21_p3 = scmp.ge.s32.totalorder %s1684_s30, 5   ;;  %s1688_s29 = smov %s1685_s25 }
 0x47f   :  { %23 = sbr.rel (!%p21_p3) target bundleno = 7 (0x7), region = 123 }
 0x486   :  { %814 = vsyncpa [#allocation6], 1 }
 0x487   :  { %816 = vsyncpa [#allocation6 + $0x1], 1 }
 0x488   :  { %817 = vsyncpa [#allocation9], 1 }
 0x489   :  { %818 = vsyncpa [#allocation7], 1 }
 0x48a   :  { %820 = vsyncpa [#allocation7 + $0x1], 1 }

</bundles_post_ra>
